<compile_context>
chip_gen: v6e
topology: v6e:2x2x1
jax: 0.10.0
libtpu: 0.0.40
codegen_flags: <defaults>
</compile_context>

<pallas_src>
import math

import jax
import jax.numpy as jnp
from jax import lax
from jax.experimental import pallas as pl
from jax.experimental.pallas import tpu as pltpu


_VMEM_LIMIT = 64 * 1024 * 1024  # safe on v5e/v6e (128 MiB) and v7x (64 MiB)


def _pick_tile(n, target):
    """Largest multiple-of-8 divisor of n that is <= target (or n itself)."""
    if n <= target:
        return n
    t = (target // 8) * 8
    while t >= 8:
        if n % t == 0:
            return t
        t -= 8
    return n  # fallback: single full block


# ----------------------------------------------------------------------------
# 1) Fused QKV projection: x (B,T,C) -> q,k,v each (B,H,T,hd) bf16, head-major.
# ----------------------------------------------------------------------------
def _qkv_proj(x, w, b, *, n_head, tm):
    B, T, C = x.shape
    assert C % n_head == 0
    hd = C // n_head
    assert T % tm == 0

    def kernel(x_ref, w_ref, b_ref, q_ref, k_ref, v_ref):
        xt = x_ref[0].astype(jnp.bfloat16)                       # (tm, C)
        acc = jnp.dot(xt, w_ref[...], preferred_element_type=jnp.float32)
        acc = (acc + b_ref[...]).astype(q_ref.dtype)             # (tm, 3C) bf16
        # Per-head slab writes: head split done in VMEM, not via XLA transposes.
        for h in range(n_head):
            q_ref[0, h] = acc[:, h * hd:(h + 1) * hd]
            k_ref[0, h] = acc[:, C + h * hd:C + (h + 1) * hd]
            v_ref[0, h] = acc[:, 2 * C + h * hd:2 * C + (h + 1) * hd]

    qkv_spec = pl.BlockSpec((1, n_head, tm, hd), lambda bi, i: (bi, 0, i, 0))
    out_sds = jax.ShapeDtypeStruct((B, n_head, T, hd), jnp.bfloat16)
    return pl.pallas_call(
        kernel,
        out_shape=(out_sds, out_sds, out_sds),
        grid_spec=pltpu.PrefetchScalarGridSpec(
            num_scalar_prefetch=0,
            grid=(B, T // tm),
            in_specs=[
                pl.BlockSpec((1, tm, C), lambda bi, i: (bi, i, 0)),
                pl.BlockSpec((C, 3 * C), lambda bi, i: (0, 0)),   # resident weight
                pl.BlockSpec((1, 3 * C), lambda bi, i: (0, 0)),
            ],
            out_specs=[qkv_spec, qkv_spec, qkv_spec],
        ),
        compiler_params=pltpu.CompilerParams(
            dimension_semantics=("parallel", "parallel"),
            vmem_limit_bytes=_VMEM_LIMIT),
    )(x, w, b)


# ----------------------------------------------------------------------------
# 2) Flash causal attention with resident per-head K/V and in-kernel kv loop.
#    q/k/v: (B, H, T, hd) bf16; q already scaled by 1/sqrt(hd).
# ----------------------------------------------------------------------------
def _flash_attention(q, k, v, *, tq):
    B, H, T, hd = q.shape
    assert T % tq == 0
    tk = tq  # square tiles: diagonal-chunk mask uses local indices directly

    def kernel(q_ref, k_ref, v_ref, o_ref):
        qi = pl.program_id(2)
        qb = q_ref[0, 0]                                          # (tq, hd) bf16

        def load_chunk(kvi):
            start = pl.multiple_of(kvi * tk, tk)
            kc = k_ref[0, 0, pl.ds(start, tk), :]
            vc = v_ref[0, 0, pl.ds(start, tk), :]
            return kc, vc

        def scores(kc):
            # q @ k^T contracting on hd directly (no explicit transpose).
            return lax.dot_general(qb, kc, (((1,), (1,)), ((), ())),
                                   preferred_element_type=jnp.float32)

        def update(s, vc, m, l, acc):
            m_new = jnp.maximum(m, jnp.max(s, axis=-1, keepdims=True))
            alpha = jnp.exp(m - m_new)
            p = jnp.exp(s - m_new)
            l_new = alpha * l + jnp.sum(p, axis=-1, keepdims=True)
            acc_new = alpha * acc + jnp.dot(p.astype(vc.dtype), vc,
                                            preferred_element_type=jnp.float32)
            return m_new, l_new, acc_new

        m0 = jnp.full((tq, 1), -jnp.inf, jnp.float32)
        l0 = jnp.zeros((tq, 1), jnp.float32)
        a0 = jnp.zeros((tq, hd), jnp.float32)

        # Strictly-below-diagonal chunks: no mask, dynamic trip count (= qi).
        def body(kvi, carry):
            m, l, acc = carry
            kc, vc = load_chunk(kvi)
            return update(scores(kc), vc, m, l, acc)

        m, l, acc = lax.fori_loop(0, qi, body, (m0, l0, a0))

        # Diagonal chunk: causal mask active (tq == tk so local idx align).
        kc, vc = load_chunk(qi)
        s = scores(kc)
        row = lax.broadcasted_iota(jnp.int32, (tq, tk), 0)
        col = lax.broadcasted_iota(jnp.int32, (tq, tk), 1)
        s = jnp.where(row >= col, s, -1e30)
        m, l, acc = update(s, vc, m, l, acc)

        inv_l = pl.reciprocal(l, approx=True)                     # EUP slot
        o_ref[0, 0] = (acc * inv_l).astype(o_ref.dtype)

    q_map = lambda b, h, qi: (b, h, qi, 0)
    kv_map = lambda b, h, qi: (b, h, 0, 0)   # constant across qi -> fetched once/head
    return pl.pallas_call(
        kernel,
        out_shape=jax.ShapeDtypeStruct((B, H, T, hd), q.dtype),
        grid_spec=pltpu.PrefetchScalarGridSpec(
            num_scalar_prefetch=0,
            grid=(B, H, T // tq),
            in_specs=[
                pl.BlockSpec((1, 1, tq, hd), q_map),
                pl.BlockSpec((1, 1, T, hd), kv_map),
                pl.BlockSpec((1, 1, T, hd), kv_map),
            ],
            out_specs=pl.BlockSpec((1, 1, tq, hd), q_map),
        ),
        compiler_params=pltpu.CompilerParams(
            dimension_semantics=("parallel", "parallel", "arbitrary"),
            vmem_limit_bytes=_VMEM_LIMIT),
    )(q, k, v)


# ----------------------------------------------------------------------------
# 3) Output projection with fused head merge: y (B,H,T,hd) -> out (B,T,C).
# ----------------------------------------------------------------------------
def _out_proj(y, w, b, *, out_dtype, tm):
    B, H, T, hd = y.shape
    C = H * hd
    assert T % tm == 0

    def kernel(y_ref, w_ref, b_ref, o_ref):
        acc = jnp.zeros((tm, C), jnp.float32)
        for h in range(H):
            acc = acc + jnp.dot(y_ref[0, h], w_ref[h * hd:(h + 1) * hd, :],
                                preferred_element_type=jnp.float32)
        o_ref[0] = (acc + b_ref[...]).astype(o_ref.dtype)

    return pl.pallas_call(
        kernel,
        out_shape=jax.ShapeDtypeStruct((B, T, C), out_dtype),
        grid_spec=pltpu.PrefetchScalarGridSpec(
            num_scalar_prefetch=0,
            grid=(B, T // tm),
            in_specs=[
                pl.BlockSpec((1, H, tm, hd), lambda bi, i: (bi, 0, i, 0)),
                pl.BlockSpec((C, C), lambda bi, i: (0, 0)),       # resident weight
                pl.BlockSpec((1, C), lambda bi, i: (0, 0)),
            ],
            out_specs=pl.BlockSpec((1, tm, C), lambda bi, i: (bi, i, 0)),
        ),
        compiler_params=pltpu.CompilerParams(
            dimension_semantics=("parallel", "parallel"),
            vmem_limit_bytes=_VMEM_LIMIT),
    )(y, w, b)


# ----------------------------------------------------------------------------
# Full CausalSelfAttention forward.
# ----------------------------------------------------------------------------
def causal_self_attention(x, w_qkv, b_qkv, w_proj, b_proj, *, n_head,
                          tq=None, tm=None):
    """x: (B,T,C); w_qkv: (C,3C); b_qkv: (1,3C); w_proj: (C,C); b_proj: (1,C)."""
    B, T, C = x.shape
    assert C % n_head == 0
    hd = C // n_head

    if tq is None:
        tq = _pick_tile(T, 256)    # fills 256x256 MXU on v6e/v7x
    if tm is None:
        tm = _pick_tile(T, 512)    # large lane-dense output slabs for the linears

    # Fold 1/sqrt(hd) into the Q columns of c_attn (parameter-side, free).
    scale = 1.0 / math.sqrt(hd)
    col_scale = jnp.concatenate(
        [jnp.full((C,), scale, jnp.float32), jnp.ones((2 * C,), jnp.float32)])
    w_qkv_s = (w_qkv.astype(jnp.float32) * col_scale[None, :]).astype(jnp.bfloat16)
    b_qkv_s = b_qkv.astype(jnp.float32) * col_scale[None, :]

    # 1) QKV projection -> head-major q/k/v (cast to bf16 inside the kernel).
    q, k, v = _qkv_proj(x, w_qkv_s, b_qkv_s, n_head=n_head, tm=tm)

    # 2) Flash causal attention.
    y = _flash_attention(q, k, v, tq=tq)                    # (B, H, T, hd) bf16

    # 3) Output projection with fused head merge.
    out = _out_proj(y, w_proj.astype(jnp.bfloat16), b_proj.astype(jnp.float32),
                    out_dtype=x.dtype, tm=tm)
    # TODO(synk): attn_dropout / resid_dropout omitted (eval mode, dropout=0).
    # TODO(synk): lane-dense 2-heads-per-step store + bf16 exp (v6e/v7x only)
    # not applied to keep one code path correct across v5e/v6e/v7x.
    return out


# ----------------------------------------------------------------------------
# Pure-JAX f32 reference + tests.
# ----------------------------------------------------------------------------
def _reference(x, w_qkv, b_qkv, w_proj, b_proj, n_head):
    B, T, C = x.shape
    hd = C // n_head
    qkv = jnp.einsum("btc,cd->btd", x, w_qkv) + b_qkv[0]
    q, k, v = jnp.split(qkv, 3, axis=-1)
    q = q.reshape(B, T, n_head, hd).transpose(0, 2, 1, 3)
    k = k.reshape(B, T, n_head, hd).transpose(0, 2, 1, 3)
    v = v.reshape(B, T, n_head, hd).transpose(0, 2, 1, 3)
    s = jnp.einsum("bhqd,bhkd->bhqk", q, k) / math.sqrt(hd)
    mask = jnp.tril(jnp.ones((T, T), dtype=bool))
    s = jnp.where(mask[None, None], s, -jnp.inf)
    p = jax.nn.softmax(s, axis=-1)
    y = jnp.einsum("bhqk,bhkd->bhqd", p, v)
    y = y.transpose(0, 2, 1, 3).reshape(B, T, C)
    return jnp.einsum("btc,cd->btd", y, w_proj) + b_proj[0]


def _run_case(key, B, T, C, H, tq=None, tm=None):
    kx, k1, k2, k3, k4 = jax.random.split(key, 5)
    x = jax.random.normal(kx, (B, T, C), dtype=jnp.float32)

    # nn.Linear-style deterministic init: U(-1/sqrt(fan_in), 1/sqrt(fan_in))
    bound = 1.0 / math.sqrt(C)
    w_qkv = jax.random.uniform(k1, (C, 3 * C), jnp.float32, -bound, bound)
    b_qkv = jax.random.uniform(k2, (1, 3 * C), jnp.float32, -bound, bound)
    w_proj = jax.random.uniform(k3, (C, C), jnp.float32, -bound, bound)
    b_proj = jax.random.uniform(k4, (1, C), jnp.float32, -bound, bound)

    out = causal_self_attention(x, w_qkv, b_qkv, w_proj, b_proj,
                                n_head=H, tq=tq, tm=tm)
    out = jax.block_until_ready(out)
    ref = _reference(x, w_qkv, b_qkv, w_proj, b_proj, H)
    assert out.shape == (B, T, C)
    # bf16 matmul operands + approx reciprocal -> relaxed tolerance vs f32 ref.
    assert jnp.allclose(out, ref, atol=3e-2, rtol=3e-2), \
        float(jnp.max(jnp.abs(out - ref)))


if __name__ == "__main__":
    key = jax.random.PRNGKey(0)
    k_a, k_b = jax.random.split(key)
    # Multi-tile config: 4 q tiles -> exercises the dynamic in-kernel kv loop,
    # the diagonal-only mask path, and multiple row tiles in the linears.
    _run_case(k_a, B=2, T=64, C=64, H=4, tq=16, tm=32)
    # Tiny single-tile config matching the module's toy sizes.
    _run_case(k_b, B=2, T=8, C=32, H=4)
    print("KERNEL_OK")
</pallas_src>

<mosaic_0001>
module attributes {stable_mosaic.version = 11 : i64} {
  func.func @kernel(%arg0: i32, %arg1: i32, %arg2: memref<1x32x64xf32, #tpu.memory_space<vmem>>, %arg3: memref<64x192xbf16, #tpu.memory_space<vmem>>, %arg4: memref<1x192xf32, #tpu.memory_space<vmem>>, %arg5: memref<1x4x32x16xbf16, #tpu.memory_space<vmem>>, %arg6: memref<1x4x32x16xbf16, #tpu.memory_space<vmem>>, %arg7: memref<1x4x32x16xbf16, #tpu.memory_space<vmem>>) attributes {dimension_semantics = [#tpu.dimension_semantics<parallel>, #tpu.dimension_semantics<parallel>], iteration_bounds = array<i64: 2, 2>, scalar_prefetch = 0 : i64, scratch_operands = 0 : i64, tpu.core_type = #tpu.core_type<tc>, window_params = [{transform_indices = @transform_0, window_bounds = array<i64: 1, 32, 64>}, {pipeline_mode = #tpu.pipeline_mode<synchronous>, transform_indices = @transform_1, window_bounds = array<i64: 64, 192>}, {pipeline_mode = #tpu.pipeline_mode<synchronous>, transform_indices = @transform_2, window_bounds = array<i64: 1, 192>}, {transform_indices = @transform_3, window_bounds = array<i64: 1, 4, 32, 16>}, {transform_indices = @transform_4, window_bounds = array<i64: 1, 4, 32, 16>}, {transform_indices = @transform_5, window_bounds = array<i64: 1, 4, 32, 16>}]} {
    %c0 = arith.constant 0 : index
    %c0_0 = arith.constant 0 : index
    %c0_1 = arith.constant 0 : index
    %0 = vector.load %arg2[%c0, %c0_0, %c0_1] : memref<1x32x64xf32, #tpu.memory_space<vmem>>, vector<1x32x64xf32>
    %1 = vector.shape_cast %0 : vector<1x32x64xf32> to vector<32x64xf32>
    %2 = arith.truncf %1 : vector<32x64xf32> to vector<32x64xbf16>
    %c0_2 = arith.constant 0 : index
    %c0_3 = arith.constant 0 : index
    %3 = vector.load %arg3[%c0_2, %c0_3] : memref<64x192xbf16, #tpu.memory_space<vmem>>, vector<64x192xbf16>
    %cst = arith.constant dense<0.000000e+00> : vector<32x192xf32>
    %4 = tpu.matmul %2, %3, %cst {dimension_numbers = #tpu.dot_dimension_numbers<[1], [0], [0], [1], [0, 0, 1, 1], [], []>} : vector<32x64xbf16>, vector<64x192xbf16>, vector<32x192xf32> -> vector<32x192xf32>
    %c0_4 = arith.constant 0 : index
    %c0_5 = arith.constant 0 : index
    %5 = vector.load %arg4[%c0_4, %c0_5] : memref<1x192xf32, #tpu.memory_space<vmem>>, vector<1x192xf32>
    %6 = vector.broadcast %5 : vector<1x192xf32> to vector<32x192xf32>
    %7 = arith.addf %4, %6 : vector<32x192xf32>
    %8 = arith.truncf %7 : vector<32x192xf32> to vector<32x192xbf16>
    %9 = vector.extract_strided_slice %8 {offsets = [0, 0], sizes = [32, 16], strides = [1, 1]} : vector<32x192xbf16> to vector<32x16xbf16>
    %c0_6 = arith.constant 0 : index
    %c0_7 = arith.constant 0 : index
    %c0_8 = arith.constant 0 : index
    %c0_9 = arith.constant 0 : index
    %10 = vector.load %arg5[%c0_6, %c0_7, %c0_8, %c0_9] : memref<1x4x32x16xbf16, #tpu.memory_space<vmem>>, vector<1x1x32x16xbf16>
    %11 = vector.shape_cast %10 : vector<1x1x32x16xbf16> to vector<32x16xbf16>
    %12 = vector.shape_cast %9 : vector<32x16xbf16> to vector<1x1x32x16xbf16>
    tpu.vector_store %arg5[%c0_6, %c0_7, %c0_8, %c0_9], %12 {strides = array<i32>} : memref<1x4x32x16xbf16, #tpu.memory_space<vmem>>, vector<1x1x32x16xbf16>,
    %13 = vector.extract_strided_slice %8 {offsets = [0, 64], sizes = [32, 16], strides = [1, 1]} : vector<32x192xbf16> to vector<32x16xbf16>
    %c0_10 = arith.constant 0 : index
    %c0_11 = arith.constant 0 : index
    %c0_12 = arith.constant 0 : index
    %c0_13 = arith.constant 0 : index
    %14 = vector.load %arg6[%c0_10, %c0_11, %c0_12, %c0_13] : memref<1x4x32x16xbf16, #tpu.memory_space<vmem>>, vector<1x1x32x16xbf16>
    %15 = vector.shape_cast %14 : vector<1x1x32x16xbf16> to vector<32x16xbf16>
    %16 = vector.shape_cast %13 : vector<32x16xbf16> to vector<1x1x32x16xbf16>
    tpu.vector_store %arg6[%c0_10, %c0_11, %c0_12, %c0_13], %16 {strides = array<i32>} : memref<1x4x32x16xbf16, #tpu.memory_space<vmem>>, vector<1x1x32x16xbf16>,
    %17 = vector.extract_strided_slice %8 {offsets = [0, 128], sizes = [32, 16], strides = [1, 1]} : vector<32x192xbf16> to vector<32x16xbf16>
    %c0_14 = arith.constant 0 : index
    %c0_15 = arith.constant 0 : index
    %c0_16 = arith.constant 0 : index
    %c0_17 = arith.constant 0 : index
    %18 = vector.load %arg7[%c0_14, %c0_15, %c0_16, %c0_17] : memref<1x4x32x16xbf16, #tpu.memory_space<vmem>>, vector<1x1x32x16xbf16>
    %19 = vector.shape_cast %18 : vector<1x1x32x16xbf16> to vector<32x16xbf16>
    %20 = vector.shape_cast %17 : vector<32x16xbf16> to vector<1x1x32x16xbf16>
    tpu.vector_store %arg7[%c0_14, %c0_15, %c0_16, %c0_17], %20 {strides = array<i32>} : memref<1x4x32x16xbf16, #tpu.memory_space<vmem>>, vector<1x1x32x16xbf16>,
    %21 = vector.extract_strided_slice %8 {offsets = [0, 16], sizes = [32, 16], strides = [1, 1]} : vector<32x192xbf16> to vector<32x16xbf16>
    %c0_18 = arith.constant 0 : index
    %c1 = arith.constant 1 : index
    %c0_19 = arith.constant 0 : index
    %c0_20 = arith.constant 0 : index
    %22 = vector.load %arg5[%c0_18, %c1, %c0_19, %c0_20] : memref<1x4x32x16xbf16, #tpu.memory_space<vmem>>, vector<1x1x32x16xbf16>
    %23 = vector.shape_cast %22 : vector<1x1x32x16xbf16> to vector<32x16xbf16>
    %24 = vector.shape_cast %21 : vector<32x16xbf16> to vector<1x1x32x16xbf16>
    tpu.vector_store %arg5[%c0_18, %c1, %c0_19, %c0_20], %24 {strides = array<i32>} : memref<1x4x32x16xbf16, #tpu.memory_space<vmem>>, vector<1x1x32x16xbf16>,
    %25 = vector.extract_strided_slice %8 {offsets = [0, 80], sizes = [32, 16], strides = [1, 1]} : vector<32x192xbf16> to vector<32x16xbf16>
    %c0_21 = arith.constant 0 : index
    %c1_22 = arith.constant 1 : index
    %c0_23 = arith.constant 0 : index
    %c0_24 = arith.constant 0 : index
    %26 = vector.load %arg6[%c0_21, %c1_22, %c0_23, %c0_24] : memref<1x4x32x16xbf16, #tpu.memory_space<vmem>>, vector<1x1x32x16xbf16>
    %27 = vector.shape_cast %26 : vector<1x1x32x16xbf16> to vector<32x16xbf16>
    %28 = vector.shape_cast %25 : vector<32x16xbf16> to vector<1x1x32x16xbf16>
    tpu.vector_store %arg6[%c0_21, %c1_22, %c0_23, %c0_24], %28 {strides = array<i32>} : memref<1x4x32x16xbf16, #tpu.memory_space<vmem>>, vector<1x1x32x16xbf16>,
    %29 = vector.extract_strided_slice %8 {offsets = [0, 144], sizes = [32, 16], strides = [1, 1]} : vector<32x192xbf16> to vector<32x16xbf16>
    %c0_25 = arith.constant 0 : index
    %c1_26 = arith.constant 1 : index
    %c0_27 = arith.constant 0 : index
    %c0_28 = arith.constant 0 : index
    %30 = vector.load %arg7[%c0_25, %c1_26, %c0_27, %c0_28] : memref<1x4x32x16xbf16, #tpu.memory_space<vmem>>, vector<1x1x32x16xbf16>
    %31 = vector.shape_cast %30 : vector<1x1x32x16xbf16> to vector<32x16xbf16>
    %32 = vector.shape_cast %29 : vector<32x16xbf16> to vector<1x1x32x16xbf16>
    tpu.vector_store %arg7[%c0_25, %c1_26, %c0_27, %c0_28], %32 {strides = array<i32>} : memref<1x4x32x16xbf16, #tpu.memory_space<vmem>>, vector<1x1x32x16xbf16>,
    %33 = vector.extract_strided_slice %8 {offsets = [0, 32], sizes = [32, 16], strides = [1, 1]} : vector<32x192xbf16> to vector<32x16xbf16>
    %c0_29 = arith.constant 0 : index
    %c2 = arith.constant 2 : index
    %c0_30 = arith.constant 0 : index
    %c0_31 = arith.constant 0 : index
    %34 = vector.load %arg5[%c0_29, %c2, %c0_30, %c0_31] : memref<1x4x32x16xbf16, #tpu.memory_space<vmem>>, vector<1x1x32x16xbf16>
    %35 = vector.shape_cast %34 : vector<1x1x32x16xbf16> to vector<32x16xbf16>
    %36 = vector.shape_cast %33 : vector<32x16xbf16> to vector<1x1x32x16xbf16>
    tpu.vector_store %arg5[%c0_29, %c2, %c0_30, %c0_31], %36 {strides = array<i32>} : memref<1x4x32x16xbf16, #tpu.memory_space<vmem>>, vector<1x1x32x16xbf16>,
    %37 = vector.extract_strided_slice %8 {offsets = [0, 96], sizes = [32, 16], strides = [1, 1]} : vector<32x192xbf16> to vector<32x16xbf16>
    %c0_32 = arith.constant 0 : index
    %c2_33 = arith.constant 2 : index
    %c0_34 = arith.constant 0 : index
    %c0_35 = arith.constant 0 : index
    %38 = vector.load %arg6[%c0_32, %c2_33, %c0_34, %c0_35] : memref<1x4x32x16xbf16, #tpu.memory_space<vmem>>, vector<1x1x32x16xbf16>
    %39 = vector.shape_cast %38 : vector<1x1x32x16xbf16> to vector<32x16xbf16>
    %40 = vector.shape_cast %37 : vector<32x16xbf16> to vector<1x1x32x16xbf16>
    tpu.vector_store %arg6[%c0_32, %c2_33, %c0_34, %c0_35], %40 {strides = array<i32>} : memref<1x4x32x16xbf16, #tpu.memory_space<vmem>>, vector<1x1x32x16xbf16>,
    %41 = vector.extract_strided_slice %8 {offsets = [0, 160], sizes = [32, 16], strides = [1, 1]} : vector<32x192xbf16> to vector<32x16xbf16>
    %c0_36 = arith.constant 0 : index
    %c2_37 = arith.constant 2 : index
    %c0_38 = arith.constant 0 : index
    %c0_39 = arith.constant 0 : index
    %42 = vector.load %arg7[%c0_36, %c2_37, %c0_38, %c0_39] : memref<1x4x32x16xbf16, #tpu.memory_space<vmem>>, vector<1x1x32x16xbf16>
    %43 = vector.shape_cast %42 : vector<1x1x32x16xbf16> to vector<32x16xbf16>
    %44 = vector.shape_cast %41 : vector<32x16xbf16> to vector<1x1x32x16xbf16>
    tpu.vector_store %arg7[%c0_36, %c2_37, %c0_38, %c0_39], %44 {strides = array<i32>} : memref<1x4x32x16xbf16, #tpu.memory_space<vmem>>, vector<1x1x32x16xbf16>,
    %45 = vector.extract_strided_slice %8 {offsets = [0, 48], sizes = [32, 16], strides = [1, 1]} : vector<32x192xbf16> to vector<32x16xbf16>
    %c0_40 = arith.constant 0 : index
    %c3 = arith.constant 3 : index
    %c0_41 = arith.constant 0 : index
    %c0_42 = arith.constant 0 : index
    %46 = vector.load %arg5[%c0_40, %c3, %c0_41, %c0_42] : memref<1x4x32x16xbf16, #tpu.memory_space<vmem>>, vector<1x1x32x16xbf16>
    %47 = vector.shape_cast %46 : vector<1x1x32x16xbf16> to vector<32x16xbf16>
    %48 = vector.shape_cast %45 : vector<32x16xbf16> to vector<1x1x32x16xbf16>
    tpu.vector_store %arg5[%c0_40, %c3, %c0_41, %c0_42], %48 {strides = array<i32>} : memref<1x4x32x16xbf16, #tpu.memory_space<vmem>>, vector<1x1x32x16xbf16>,
    %49 = vector.extract_strided_slice %8 {offsets = [0, 112], sizes = [32, 16], strides = [1, 1]} : vector<32x192xbf16> to vector<32x16xbf16>
    %c0_43 = arith.constant 0 : index
    %c3_44 = arith.constant 3 : index
    %c0_45 = arith.constant 0 : index
    %c0_46 = arith.constant 0 : index
    %50 = vector.load %arg6[%c0_43, %c3_44, %c0_45, %c0_46] : memref<1x4x32x16xbf16, #tpu.memory_space<vmem>>, vector<1x1x32x16xbf16>
    %51 = vector.shape_cast %50 : vector<1x1x32x16xbf16> to vector<32x16xbf16>
    %52 = vector.shape_cast %49 : vector<32x16xbf16> to vector<1x1x32x16xbf16>
    tpu.vector_store %arg6[%c0_43, %c3_44, %c0_45, %c0_46], %52 {strides = array<i32>} : memref<1x4x32x16xbf16, #tpu.memory_space<vmem>>, vector<1x1x32x16xbf16>,
    %53 = vector.extract_strided_slice %8 {offsets = [0, 176], sizes = [32, 16], strides = [1, 1]} : vector<32x192xbf16> to vector<32x16xbf16>
    %c0_47 = arith.constant 0 : index
    %c3_48 = arith.constant 3 : index
    %c0_49 = arith.constant 0 : index
    %c0_50 = arith.constant 0 : index
    %54 = vector.load %arg7[%c0_47, %c3_48, %c0_49, %c0_50] : memref<1x4x32x16xbf16, #tpu.memory_space<vmem>>, vector<1x1x32x16xbf16>
    %55 = vector.shape_cast %54 : vector<1x1x32x16xbf16> to vector<32x16xbf16>
    %56 = vector.shape_cast %53 : vector<32x16xbf16> to vector<1x1x32x16xbf16>
    tpu.vector_store %arg7[%c0_47, %c3_48, %c0_49, %c0_50], %56 {strides = array<i32>} : memref<1x4x32x16xbf16, #tpu.memory_space<vmem>>, vector<1x1x32x16xbf16>,
    return
  }
  func.func @transform_0(%arg0: i32, %arg1: i32) -> (i32, i32, i32) {
    %c0_i32 = arith.constant 0 : i32
    %c0_i32_0 = arith.constant 0 : i32
    return %arg0, %arg1, %c0_i32 : i32, i32, i32
  }
  func.func @transform_1(%arg0: i32, %arg1: i32) -> (i32, i32) {
    %c0_i32 = arith.constant 0 : i32
    %c0_i32_0 = arith.constant 0 : i32
    %c0_i32_1 = arith.constant 0 : i32
    return %c0_i32, %c0_i32_0 : i32, i32
  }
  func.func @transform_2(%arg0: i32, %arg1: i32) -> (i32, i32) {
    %c0_i32 = arith.constant 0 : i32
    %c0_i32_0 = arith.constant 0 : i32
    %c0_i32_1 = arith.constant 0 : i32
    return %c0_i32, %c0_i32_0 : i32, i32
  }
  func.func @transform_3(%arg0: i32, %arg1: i32) -> (i32, i32, i32, i32) {
    %c0_i32 = arith.constant 0 : i32
    %c0_i32_0 = arith.constant 0 : i32
    %c0_i32_1 = arith.constant 0 : i32
    return %arg0, %c0_i32, %arg1, %c0_i32_0 : i32, i32, i32, i32
  }
  func.func @transform_4(%arg0: i32, %arg1: i32) -> (i32, i32, i32, i32) {
    %c0_i32 = arith.constant 0 : i32
    %c0_i32_0 = arith.constant 0 : i32
    %c0_i32_1 = arith.constant 0 : i32
    return %arg0, %c0_i32, %arg1, %c0_i32_0 : i32, i32, i32, i32
  }
  func.func @transform_5(%arg0: i32, %arg1: i32) -> (i32, i32, i32, i32) {
    %c0_i32 = arith.constant 0 : i32
    %c0_i32_0 = arith.constant 0 : i32
    %c0_i32_1 = arith.constant 0 : i32
    return %arg0, %c0_i32, %arg1, %c0_i32_0 : i32, i32, i32, i32
  }
}

</mosaic_0001>

<bundles_post_ra>
// kernel: tpu_custom_call.1
= control target key start
LH: loop header
LB: loop body
LE: loop exit
PB: predicated region body
PF: predicated region fallthrough
CT: control target
= control target key end

     0   :  { %s1830_s0 = inlined_call_operand.hbm [shape: f32[2,64,64], index: 0, kind: input, shape index: {}]   ;;  %s1831_s1 = inlined_call_operand.hbm [shape: bf16[64,192], index: 1, kind: input, shape index: {}]   ;;  %s1832_s2 = inlined_call_operand.vmem [shape: f32[1,192], index: 2, kind: input, shape index: {}]   ;;  %s1833_s3 = inlined_call_operand.vmem [shape: bf16[2,4,64,16], index: 3, kind: output, shape index: {0}]   ;;  %s1834_s4 = inlined_call_operand.vmem [shape: bf16[2,4,64,16], index: 4, kind: output, shape index: {1}]   ;;  %s1835_s5 = inlined_call_operand.vmem [shape: bf16[2,4,64,16], index: 5, kind: output, shape index: {2}]  }
   0x1   :  { %1840 = sst [smem:[#allocation13_spill]] %s1831_s1 }
   0x2   :  { %1841 = sst [smem:[#allocation14_spill]] %s1833_s3 }
   0x3   :  { %1842 = sst [smem:[#allocation15_spill]] %s1834_s4 }
   0x4   :  { %1843 = sst [smem:[#allocation16_spill]] %s1835_s5 }
   0x5   :  { %11 = vsyncpa [#allocation3], 0 }
   0x6   :  { %13 = vsyncpa [#allocation3 + $0x1], 0 }
   0x7   :  { %14 = vsyncpa [#allocation5], 0  ;;  %s1491_s18 = smov 0   ;;  %s1493_s19 = smov 0  }
   0x8   :  { %s1495_s20 = smov 0   ;;  %s1497_s21 = smov 0  }
   0x9   :  { %s1499_s22 = smov 0   ;;  %s1501_s23 = smov 0  }
   0xa   :  { %s1503_s24 = smov 0   ;;  %s1505_s25 = smov 0  }
   0xb LB: > { %1844 = sst [smem:[#allocation11_spill]] %s1435_s22  ;;  %s1120_s26 = sadd.s32 4294967295, %s1447_s25   ;;  %s1447_s25 = sphi %s1505_s25, %s20_s25   ;;  %s1443_s24 = sphi %s1503_s24, %s1870_s24   ;;  %s1439_s23 = sphi %s1501_s23, %s1869_s23   ;;  %s1435_s22 = sphi %s1499_s22, %s1868_s22   ;;  %s1431_s21 = sphi %s1497_s21, %s1867_s21   ;;  %s1427_s20 = sphi %s1495_s20, %s1866_s20   ;;  %s1423_s19 = sphi %s1493_s19, %s1865_s19   ;;  %s1419_s18 = sphi %s1491_s18, %s1864_s18  }
   0xc   : > { %p54_p0 = scmp.ne.s32.totalorder %s1423_s19, %s1419_s18  ;;  %p1531_p1 = scmp.eq.s32.totalorder %s1120_s26, 0 }
   0xd   : > { %p1535_p2 = scmp.eq.s32.totalorder %s1120_s26, 3  ;;  %p1122_p3 = scmp.ge.s32.totalorder %s1447_s25, 1 }
   0xe   : > { %p191_p4 = scmp.lt.s32.totalorder %s1447_s25, 5  ;;  %p1543_p5 = por %p1531_p1, %p54_p0 }
   0xf   : > { %s1449_s6 = smov [#allocation4]  }
  0x10   : > { %s1847_s29 = scalar_select %p1543_p5, 1, 0 }
  0x11   : > { %p1547_p6 = pnand %p1122_p3, %p191_p4  ;;  %s203_s7 = sshll.u32 %s1449_s6, 4  ;;  %s204_s7 = int_to_ptr.vmem [resolvable:$true] %s203_s7 }
  0x12   : > { %s1334_s8 = scalar_lea.vmem %s204_s7, 1024  ;;  %p1342_p13 = scmp.lt.s32.totalorder %s204_s7, %s204_s7 }
  0x13   : > { %p1225_p7 = pneg %p1547_p6  ;;  %p1335_p10 = scmp.ne.s32.totalorder %s204_s7, %s1334_s8 }
  0x14   : > { %p1343_p0 = scmp.lt.s32.totalorder %s1334_s8, %s1334_s8 }
  0x15   : > { %p1226_p8 = pnand %p1225_p7, %p1531_p1 }
  0x16   : > { %p1344_p5 = por %p1343_p0, %p1342_p13 }
  0x17   : > { %p1325_p9 = pneg %p1226_p8 }
  0x19   : > { %p1337_p11 = pnand %p1335_p10, %p1325_p9 }
  0x1b   : > { %p1338_p12 = pneg %p1337_p11 }
  0x1d   : > { %p1345_p3 = pnand %p1344_p5, %p1338_p12 }
  0x1f   : > { %1348 = shalt.err (!%p1345_p3)
}
  0x20   : > { %s1837_s9 = smov 128   ;;  %s1838_s10 = smov 8  }
  0x21   : > { %s1849_s1 = sld [smem:[#allocation13_spill]]  ;;  %s29_s13 = sadd.s32 1, %s1439_s23 }
  0x22   : > { %s32_s14 = sadd.s32 1, %s1443_s24  ;;  %p30_p4 = scmp.ge.s32.totalorder %s29_s13, 2 }
  0x23   : > { %s41_s15 = sadd.s32 1, %s1427_s20  ;;  %p48_p5 = scmp.ne.s32.totalorder %s1427_s20, %s1423_s19 }
  0x24   : > { %p49_p7 = scmp.eq.s32.totalorder %s1447_s25, 0  ;;  %s1872_s13 = smov (%p30_p4, %s29_s13), 0 }
  0x25   : > { %1850 = sst [smem:[#allocation12_spill]] %s1872_s13  ;;  %s1874_s14 = smov (!%p30_p4, %s32_s14), %s1443_s24 }
  0x26   : > { %s37_s16 = ssub.s32 %s1439_s23, %s1872_s13  ;;  %p1572_p9 = por %p49_p7, %p48_p5 }
  0x27   : > { %1228 = dma.hbm_to_vmem [thread:$0]  (!%p1226_p8), %s1849_s1, 1024, %s204_s7, [#allocation5], %s1837_s9, %s1837_s9, %s1838_s10  }
  0x28   : > { %p34_p8 = scmp.ge.s32.totalorder %s1874_s14, 2  ;;  %p1578_p10 = por %p1535_p2, %p48_p5 }
  0x29   : > { %p1234_p11 = scmp.lt.s32.totalorder %s1447_s25, 4  ;;  %s220_s26 = sand.u32 1, %s1427_s20  }
  0x2a   : > { %s1876_s14 = smov (%p34_p8, %s1874_s14), 0  ;;  %s1125_s6 = sshll.u32 %s220_s26, 5 }
  0x2b   : > { %s36_s7 = ssub.s32 %s1443_s24, %s1876_s14  ;;  %s1126_s11 = sshll.u32 %s1439_s23, 2 }
  0x2c   : > { %s38_s8 = sor.u32 %s37_s16, %s36_s7  ;;  %s1127_s12 = sshll.u32 %s1443_s24, 3 }
  0x2d   : > { %p39_p12 = scmp.eq.s32.totalorder %s38_s8, 0  ;;  %s230_s9 = sadd.s32 %s1127_s12, %s1126_s11 }
  0x2e   : > { %s224_s10 = scalar_lea.vmem [#allocation2], %s1125_s6  ;;  %s1128_s13 = sshll.u32 %s230_s9, 7 }
  0x2f   : > { %s233_s28 = sshll.u32 %s224_s10, 4  ;;  %s232_s3 = scalar_lea.hbm %s1830_s0, %s1128_s13  ;;  %s234_s28 = int_to_ptr.vmem [resolvable:$true] %s233_s28 }
  0x30   : > { %s1591_s1 = scalar_select %p39_p12, %s1427_s20, %s41_s15  }
  0x31   : > { %p1600_p2 = pnand %p1234_p11, %p1572_p9  ;;  %s221_s16 = scalar_lea.sflag [#allocation3], %s220_s26 }
  0x32   : > { %s1362_s6 = scalar_lea.vmem %s234_s28, 512  ;;  %s1452_s9 = smov [#allocation2]  }
  0x33   : > { %p1351_p13 = pneg %p1600_p2  ;;  %p1363_p0 = scmp.ne.s32.totalorder %s234_s28, %s1362_s6 }
  0x34   : > { %s1367_s10 = sshll.u32 %s1452_s9, 4  ;;  %s1368_s10 = int_to_ptr.vmem [resolvable:$false] %s1367_s10 }
  0x35   : > { %p1365_p3 = pnand %p1363_p0, %p1351_p13  ;;  %s1369_s15 = scalar_lea.vmem %s1368_s10, 1024 }
  0x36   : > { %p1370_p5 = scmp.lt.s32.totalorder %s234_s28, %s1368_s10  ;;  %p1371_p7 = scmp.lt.s32.totalorder %s1369_s15, %s1362_s6 }
  0x37   : > { %p1366_p4 = pneg %p1365_p3 }
  0x38   : > { %p1372_p8 = por %p1371_p7, %p1370_p5 }
  0x3a   : > { %p1373_p12 = pnand %p1372_p8, %p1366_p4 }
  0x3c   : > { %1376 = shalt.err (!%p1373_p12)
}
  0x3d   : > { %s1854_s4 = smov 8   ;;  %s1855_s5 = smov 128  }
  0x3e   : > { %1232 = dma.hbm_to_vmem [thread:$0]  (!%p1600_p2), %s232_s3, 512, %s234_s28, %s221_s16, %s1855_s5, %s1855_s5, %s1854_s4  }
  0x3f   : > { %245 = sbr.rel (%p1547_p6) target bundleno = 507 (0x1fb), region = 32  ;;  %s1614_s13 = sand.u32 (!%p1547_p6), 1, %s1423_s19  }
  0x40   : > { %s1130_s17 = sshll.u32 (!%p1547_p6), %s1614_s13, 5  ;;  %s248_s26 = scalar_lea.sflag (!%p1547_p6), [#allocation3], %s1614_s13 }
  0x41   : > { %s1618_s7 = scalar_lea.vmem (!%p1547_p6), [#allocation2], %s1130_s17  ;;  %p1856_p9 = scmp.ne.s32.totalorder (!%p1547_p6), %s1847_s29, 0 }
  0x44   : > { %1410 = dma.done.wait (%p1856_p9), %s248_s26, 512  }
  0x45   : > { %1412 = vsyncadd (%p1856_p9), %s248_s26, 4294966784 }
  0x46   : > { %1414 = dma.done.wait (%p1531_p1), [#allocation5], 1024  }
  0x47   : > { %1416 = vsyncadd (%p1531_p1), [#allocation5], 4294966272  ;;  %v1453_v0 = vmov 0   ;;  %v1311_v1 = vld [vmem:[#allocation4 + $0x34] ss:$8 sps:$4 sm:$0xff]   ;;  %v294_v9 = vld [vmem:[%s1618_s7] sm:$0xff]  ;;  %v310_v15 = vlaneseq }
  0x48   : > { %399 = vmatprep.mubr.bf16.mxu0 %v1453_v0  ;;  %409 = vmatprep.mubr.bf16.mxu1 %v1453_v0  ;;  %v1313_v2 = vld [vmem:[#allocation4 + $0x30] ss:$8 sps:$4 sm:$0xff]   ;;  %v1314_v3 = vld [vmem:[#allocation4 + $0x24] ss:$8 sps:$4 sm:$0xff]   ;;  %v1316_v4 = vld [vmem:[#allocation4 + $0x20] ss:$8 sps:$4 sm:$0xff]  }
  0x49   : > { %375 = vmatprep.subr.bf16.mxu0 %v1311_v1  ;;  %1211 = vmatprep.subr.bf16.mxu1 %v1311_v1  ;;  %v1317_v5 = vld [vmem:[#allocation4 + $0x14] ss:$8 sps:$4 sm:$0xff]   ;;  %v1319_v6 = vld [vmem:[#allocation4 + $0x10] ss:$8 sps:$4 sm:$0xff]   ;;  %v1320_v7 = vld [vmem:[#allocation4 + $0x4] ss:$8 sps:$4 sm:$0xff]  }
  0x4a   : > { %376 = vmatpush1.bf16.msra.mxu0 %v1313_v2  ;;  %1215 = vmatpush1.bf16.msra.mxu1 %v1313_v2  ;;  %v1322_v8 = vld [vmem:[#allocation4] ss:$8 sps:$4 sm:$0xff]   ;;  %v296_v11 = vld [vmem:[%s1618_s7 + $0x10] sm:$0xff]  ;;  %v297_v12 = vld [vmem:[%s1618_s7 + $0x18] sm:$0xff]  ;;  %vm360_vm0 = vcmask 523264   ;;  %v311_v16 = vshrl.u32 %v310_v15, 7 }
  0x4b   : > { %377 = vmatprep.subr.bf16.mxu0 %v1314_v3  ;;  %1212 = vmatprep.subr.bf16.mxu1 %v1314_v3  ;;  %v295_v10 = vld [vmem:[%s1618_s7 + $0x8] sm:$0xff]  ;;  %v299_v14 = vpack.c.bf16 %v297_v12, %v296_v11  ;;  %v308_v18 = vld [vmem:[%s1832_s2] sm:$0x3]  ;;  %s1636_s27 = sshll.u32 %s1614_s13, 6  ;;  %vm438_vm1 = vcmask 125952   ;;  %s1454_s30 = smov 64  }
  0x4c   : > { %v298_v13 = vpack.c.bf16 %v295_v10, %v294_v9  ;;  %v312_v17 = vsub.s32 0, %v311_v16  ;;  %v316_v19 = vsub.s32 1, %v311_v16  ;;  %s1639_s29 = scalar_lea.vmem [#allocation6], %s1636_s27  ;;  %s1650_s8 = scalar_lea.vmem [#allocation8], %s1636_s27 }
  0x4d   : > { %s1455_s11 = smov 112   ;;  %s1456_s12 = smov 48  }
  0x4e   : > { %378 = vmatpush1.bf16.msra.mxu0 %v1316_v4  ;;  %1216 = vmatpush1.bf16.msra.mxu1 %v1316_v4  ;;  %v313_v20 = vrot.slane %v308_v18, %v312_v17  ;;  %v317_v21 = vrot.slane %v308_v18, %v316_v19  ;;  %s1457_s28 = smov 96   ;;  %s1458_s16 = smov 32  }
  0x4f   : > { %379 = vmatprep.subr.bf16.mxu0 %v1317_v5  ;;  %1213 = vmatprep.subr.bf16.mxu1 %v1317_v5  ;;  %s1459_s6 = smov 80   ;;  %s1460_s9 = smov 16  }
  0x50   : > { %s1679_s10 = scalar_lea.vmem [#allocation7], %s1636_s27  ;;  %s1857_s15 = sld [smem:[#allocation11_spill]] (%p1578_p10) }
  0x51   : > { %s1192_s4 = sshll.u32 (%p1578_p10), %s1431_s21, 2  ;;  %s1858_s3 = sld [smem:[#allocation14_spill]] (%p1578_p10) }
  0x52   : > { %380 = vmatpush1.bf16.msra.mxu0 %v1319_v6  ;;  %1217 = vmatpush1.bf16.msra.mxu1 %v1319_v6 }
  0x53   : > { %381 = vmatprep.subr.bf16.mxu0 %v1320_v7  ;;  %1214 = vmatprep.subr.bf16.mxu1 %v1320_v7 }
  0x56   : > { %382 = vmatpush1.bf16.msra.mxu0 %v1322_v8  ;;  %1218 = vmatpush1.bf16.msra.mxu1 %v1322_v8  ;;  %s1193_s5 = sshll.u32 (%p1578_p10), %s1857_s15, 5 }
  0x57   : > { %s647_s13 = sadd.s32 (%p1578_p10), %s1193_s5, %s1192_s4 }
  0x58   : > { %s1194_s17 = sshll.u32 (%p1578_p10), %s647_s13, 2 }
  0x59   : > { %1143 = vmatmul.mubr.msk.bf16.vlgmr.msra.gmra.mxu0 %vm360_vm0, %v298_v13  ;;  %1144 = vmatmul.mubr.msk.bf16.vlgmr.msra.gmra.mxu1 %vm360_vm0, %v299_v14  ;;  %s649_s22 = scalar_lea.vmem (%p1578_p10), %s1858_s3, %s1194_s17 }
 0x119   : > { %v401_v22 = vpop.f32.mrf.mxu0  ;;  %v411_v23 = vpop.f32.mrf.mxu1 }
 0x11a   : > { %v402_v24 = vadd.f32 %v401_v22, %v313_v20  ;;  %v412_v25 = vadd.f32 %v411_v23, %v313_v20 }
 0x11b   : > { %v403_v26 = vpop.f32.mrf.mxu0  ;;  %v413_v27 = vpop.f32.mrf.mxu1 }
 0x11c   : > { %v1203_v28 = vpack.c.bf16 %v402_v24, %v402_v24  ;;  %v1205_v29 = vpack.c.bf16 %v412_v25, %v412_v25  ;;  %v404_v30 = vadd.f32 %v403_v26, %v317_v21  ;;  %v414_v31 = vadd.f32 %v413_v27, %v317_v21 }
 0x11d   : > { %v405_v32 = vpop.f32.mrf.mxu0  ;;  %v415_v33 = vpop.f32.mrf.mxu1 }
 0x11e   : > { %439 = vst.msk [vmem:[%s1639_s29] sm:$0xf] %vm438_vm1, %v1203_v28  ;;  %441 = vst.msk [vmem:[%s1639_s29 + $0x8] sm:$0xf] %vm438_vm1, %v1205_v29  ;;  %v1207_v34 = vpack.c.bf16 %v404_v30, %v404_v30  ;;  %v1645_v35 = vpack.c.bf16 %v414_v31, %v414_v31  ;;  %v406_v36 = vadd.f32 %v405_v32, %v313_v20  ;;  %447 = vrot.lane.b32.xlu1 %v1205_v29, %s1454_s30 }
 0x11f   : > { %v416_v37 = vadd.f32 %v415_v33, %v313_v20  ;;  %443 = vrot.lane.b32.xlu0 %v1203_v28, %s1454_s30  ;;  %v407_v38 = vpop.f32.mrf.mxu0  ;;  %v417_v39 = vpop.f32.mrf.mxu1 }
 0x120   : > { %473 = vst.msk [vmem:[%s1650_s8] sm:$0xf] %vm438_vm1, %v1207_v34  ;;  %475 = vst.msk [vmem:[%s1650_s8 + $0x8] sm:$0xf] %vm438_vm1, %v1645_v35  ;;  %v1204_v40 = vpack.c.bf16 %v406_v36, %v406_v36  ;;  %v408_v42 = vadd.f32 %v407_v38, %v317_v21  ;;  %v418_v43 = vadd.f32 %v417_v39, %v317_v21 }
 0x121   : > { %v1206_v41 = vpack.c.bf16 %v416_v37, %v416_v37 }
 0x122   : > { %440 = vst.msk [vmem:[%s1639_s29 + $0x4] sm:$0xf] %vm438_vm1, %v1204_v40  ;;  %v1208_v44 = vpack.c.bf16 %v408_v42, %v408_v42  ;;  %v1210_v45 = vpack.c.bf16 %v418_v43, %v418_v43 }
 0x123   : > { %442 = vst.msk [vmem:[%s1639_s29 + $0xc] sm:$0xf] %vm438_vm1, %v1206_v41  ;;  %449 = vrot.lane.b32.xlu1 %v1206_v41, %s1454_s30  ;;  %477 = vrot.lane.b32.xlu0 %v1203_v28, %s1455_s11 }
 0x124   : > { %474 = vst.msk [vmem:[%s1650_s8 + $0x4] sm:$0xf] %vm438_vm1, %v1208_v44  ;;  %476 = vst.msk [vmem:[%s1650_s8 + $0xc] sm:$0xf] %vm438_vm1, %v1210_v45 }
 0x127   : > { %479 = vrot.lane.b32.xlu1 %v1204_v40, %s1455_s11  ;;  %481 = vrot.lane.b32.xlu0 %v1205_v29, %s1455_s11 }
 0x129   : > { %v666_v22 = vld [vmem:[%s1639_s29] sm:$0xff] (%p1578_p10)  }
 0x12a   : > { %v670_v23 = vld [vmem:[%s1639_s29 + $0x8] sm:$0xff] (%p1578_p10)   ;;  %667 = vst [vmem:[%s649_s22] sm:$0xff] (%p1578_p10), %v666_v22  }
 0x12b   : > { %483 = vrot.lane.b32.xlu1 %v1206_v41, %s1455_s11  ;;  %494 = vrot.lane.b32.xlu0 %v1203_v28, %s1456_s12  ;;  %671 = vst [vmem:[%s649_s22 + $0x8] sm:$0xff] (%p1578_p10), %v670_v23  }
 0x12f   : > { %496 = vrot.lane.b32.xlu1 %v1204_v40, %s1456_s12  ;;  %498 = vrot.lane.b32.xlu0 %v1205_v29, %s1456_s12 }
 0x133   : > { %500 = vrot.lane.b32.xlu1 %v1206_v41, %s1456_s12  ;;  %528 = vrot.lane.b32.xlu0 %v1203_v28, %s1457_s28 }
 0x137   : > { %530 = vrot.lane.b32.xlu1 %v1204_v40, %s1457_s28  ;;  %532 = vrot.lane.b32.xlu0 %v1205_v29, %s1457_s28 }
 0x13b   : > { %534 = vrot.lane.b32.xlu1 %v1206_v41, %s1457_s28  ;;  %545 = vrot.lane.b32.xlu0 %v1203_v28, %s1458_s16 }
 0x13f   : > { %547 = vrot.lane.b32.xlu1 %v1204_v40, %s1458_s16  ;;  %549 = vrot.lane.b32.xlu0 %v1205_v29, %s1458_s16 }
 0x143   : > { %551 = vrot.lane.b32.xlu1 %v1206_v41, %s1458_s16  ;;  %579 = vrot.lane.b32.xlu0 %v1203_v28, %s1459_s6 }
 0x147   : > { %581 = vrot.lane.b32.xlu1 %v1204_v40, %s1459_s6  ;;  %583 = vrot.lane.b32.xlu0 %v1205_v29, %s1459_s6 }
 0x14b   : > { %585 = vrot.lane.b32.xlu1 %v1206_v41, %s1459_s6  ;;  %596 = vrot.lane.b32.xlu0 %v1203_v28, %s1460_s9 }
 0x14f   : > { %598 = vrot.lane.b32.xlu1 %v1204_v40, %s1460_s9  ;;  %600 = vrot.lane.b32.xlu0 %v1205_v29, %s1460_s9 }
 0x153   : > { %602 = vrot.lane.b32.xlu1 %v1206_v41, %s1460_s9  ;;  %511 = vrot.lane.b32.xlu0 %v1207_v34, %s1455_s11 }
 0x157   : > { %513 = vrot.lane.b32.xlu1 %v1208_v44, %s1455_s11  ;;  %515 = vrot.lane.b32.xlu0 %v1645_v35, %s1455_s11 }
 0x15b   : > { %517 = vrot.lane.b32.xlu1 %v1210_v45, %s1455_s11  ;;  %562 = vrot.lane.b32.xlu0 %v1207_v34, %s1457_s28 }
 0x15f   : > { %564 = vrot.lane.b32.xlu1 %v1208_v44, %s1457_s28  ;;  %566 = vrot.lane.b32.xlu0 %v1645_v35, %s1457_s28 }
 0x163   : > { %568 = vrot.lane.b32.xlu1 %v1210_v45, %s1457_s28  ;;  %613 = vrot.lane.b32.xlu0 %v1207_v34, %s1459_s6 }
 0x167   : > { %615 = vrot.lane.b32.xlu1 %v1208_v44, %s1459_s6  ;;  %445 = vrot.lane.b32.xlu0 %v1204_v40, %s1454_s30 }
 0x16b   : > { %619 = vrot.lane.b32.xlu1 %v1210_v45, %s1459_s6  ;;  %617 = vrot.lane.b32.xlu0 %v1645_v35, %s1459_s6 }
 0x190   : > { %v448_v46 = vpop.permute.xlu1 %447 }
 0x191   : > { %457 = vst.msk [vmem:[%s1679_s10 + $0x8] sm:$0xf] %vm438_vm1, %v448_v46  ;;  %v444_v47 = vpop.permute.xlu0 %443 }
 0x192   : > { %455 = vst.msk [vmem:[%s1679_s10] sm:$0xf] %vm438_vm1, %v444_v47 }
 0x195   : > { %v450_v48 = vpop.permute.xlu1 %449  ;;  %v478_v49 = vpop.permute.xlu0 %477 }
 0x196   : > { %458 = vst.msk [vmem:[%s1679_s10 + $0xc] sm:$0xf] %vm438_vm1, %v450_v48  ;;  %1153 = vst.msk [vmem:[%s1639_s29 + $0x10] sm:$0xf] %vm438_vm1, %v478_v49 }
 0x199   : > { %v480_v50 = vpop.permute.xlu1 %479  ;;  %v482_v51 = vpop.permute.xlu0 %481 }
 0x19a   : > { %1154 = vst.msk [vmem:[%s1639_s29 + $0x14] sm:$0xf] %vm438_vm1, %v480_v50  ;;  %1155 = vst.msk [vmem:[%s1639_s29 + $0x18] sm:$0xf] %vm438_vm1, %v482_v51 }
 0x19d   : > { %v484_v52 = vpop.permute.xlu1 %483  ;;  %v495_v53 = vpop.permute.xlu0 %494 }
 0x19e   : > { %1156 = vst.msk [vmem:[%s1639_s29 + $0x1c] sm:$0xf] %vm438_vm1, %v484_v52  ;;  %1157 = vst.msk [vmem:[%s1679_s10 + $0x10] sm:$0xf] %vm438_vm1, %v495_v53 }
 0x1a1   : > { %v497_v54 = vpop.permute.xlu1 %496  ;;  %v499_v55 = vpop.permute.xlu0 %498  ;;  %v674_v24 = vld [vmem:[%s1639_s29 + $0x10] sm:$0xff] (%p1578_p10)  }
 0x1a2   : > { %1158 = vst.msk [vmem:[%s1679_s10 + $0x14] sm:$0xf] %vm438_vm1, %v497_v54  ;;  %1159 = vst.msk [vmem:[%s1679_s10 + $0x18] sm:$0xf] %vm438_vm1, %v499_v55 }
 0x1a3   : > { %675 = vst [vmem:[%s649_s22 + $0x20] sm:$0xff] (%p1578_p10), %v674_v24  }
 0x1a5   : > { %v501_v56 = vpop.permute.xlu1 %500  ;;  %v529_v57 = vpop.permute.xlu0 %528  ;;  %v678_v25 = vld [vmem:[%s1639_s29 + $0x18] sm:$0xff] (%p1578_p10)  }
 0x1a6   : > { %1160 = vst.msk [vmem:[%s1679_s10 + $0x1c] sm:$0xf] %vm438_vm1, %v501_v56  ;;  %1165 = vst.msk [vmem:[%s1639_s29 + $0x20] sm:$0xf] %vm438_vm1, %v529_v57 }
 0x1a7   : > { %679 = vst [vmem:[%s649_s22 + $0x28] sm:$0xff] (%p1578_p10), %v678_v25  }
 0x1a9   : > { %v531_v58 = vpop.permute.xlu1 %530  ;;  %v533_v59 = vpop.permute.xlu0 %532 }
 0x1aa   : > { %1166 = vst.msk [vmem:[%s1639_s29 + $0x24] sm:$0xf] %vm438_vm1, %v531_v58  ;;  %1167 = vst.msk [vmem:[%s1639_s29 + $0x28] sm:$0xf] %vm438_vm1, %v533_v59 }
 0x1ad   : > { %v535_v60 = vpop.permute.xlu1 %534  ;;  %v546_v61 = vpop.permute.xlu0 %545 }
 0x1ae   : > { %1168 = vst.msk [vmem:[%s1639_s29 + $0x2c] sm:$0xf] %vm438_vm1, %v535_v60  ;;  %1169 = vst.msk [vmem:[%s1679_s10 + $0x20] sm:$0xf] %vm438_vm1, %v546_v61 }
 0x1b1   : > { %v548_v62 = vpop.permute.xlu1 %547  ;;  %v550_v63 = vpop.permute.xlu0 %549  ;;  %v682_v26 = vld [vmem:[%s1639_s29 + $0x20] sm:$0xff] (%p1578_p10)  }
 0x1b2   : > { %1170 = vst.msk [vmem:[%s1679_s10 + $0x24] sm:$0xf] %vm438_vm1, %v548_v62  ;;  %1171 = vst.msk [vmem:[%s1679_s10 + $0x28] sm:$0xf] %vm438_vm1, %v550_v63 }
 0x1b3   : > { %683 = vst [vmem:[%s649_s22 + $0x40] sm:$0xff] (%p1578_p10), %v682_v26  }
 0x1b5   : > { %v552_v0 = vpop.permute.xlu1 %551  ;;  %v580_v1 = vpop.permute.xlu0 %579  ;;  %v686_v27 = vld [vmem:[%s1639_s29 + $0x28] sm:$0xff] (%p1578_p10)  }
 0x1b6   : > { %1172 = vst.msk [vmem:[%s1679_s10 + $0x2c] sm:$0xf] %vm438_vm1, %v552_v0  ;;  %1177 = vst.msk [vmem:[%s1639_s29 + $0x30] sm:$0xf] %vm438_vm1, %v580_v1 }
 0x1b7   : > { %687 = vst [vmem:[%s649_s22 + $0x48] sm:$0xff] (%p1578_p10), %v686_v27  }
 0x1b9   : > { %v582_v2 = vpop.permute.xlu1 %581  ;;  %v584_v3 = vpop.permute.xlu0 %583 }
 0x1ba   : > { %1178 = vst.msk [vmem:[%s1639_s29 + $0x34] sm:$0xf] %vm438_vm1, %v582_v2  ;;  %1179 = vst.msk [vmem:[%s1639_s29 + $0x38] sm:$0xf] %vm438_vm1, %v584_v3 }
 0x1bd   : > { %v586_v4 = vpop.permute.xlu1 %585  ;;  %v597_v5 = vpop.permute.xlu0 %596 }
 0x1be   : > { %1180 = vst.msk [vmem:[%s1639_s29 + $0x3c] sm:$0xf] %vm438_vm1, %v586_v4  ;;  %1181 = vst.msk [vmem:[%s1679_s10 + $0x30] sm:$0xf] %vm438_vm1, %v597_v5 }
 0x1c1   : > { %v599_v6 = vpop.permute.xlu1 %598  ;;  %v601_v7 = vpop.permute.xlu0 %600  ;;  %v690_v28 = vld [vmem:[%s1639_s29 + $0x30] sm:$0xff] (%p1578_p10)  }
 0x1c2   : > { %1182 = vst.msk [vmem:[%s1679_s10 + $0x34] sm:$0xf] %vm438_vm1, %v599_v6  ;;  %1183 = vst.msk [vmem:[%s1679_s10 + $0x38] sm:$0xf] %vm438_vm1, %v601_v7 }
 0x1c3   : > { %691 = vst [vmem:[%s649_s22 + $0x60] sm:$0xff] (%p1578_p10), %v690_v28  }
 0x1c5   : > { %v603_v8 = vpop.permute.xlu1 %602  ;;  %v512_v9 = vpop.permute.xlu0 %511  ;;  %v694_v29 = vld [vmem:[%s1639_s29 + $0x38] sm:$0xff] (%p1578_p10)  }
 0x1c6   : > { %1184 = vst.msk [vmem:[%s1679_s10 + $0x3c] sm:$0xf] %vm438_vm1, %v603_v8  ;;  %1161 = vst.msk [vmem:[%s1650_s8 + $0x10] sm:$0xf] %vm438_vm1, %v512_v9 }
 0x1c7   : > { %695 = vst [vmem:[%s649_s22 + $0x68] sm:$0xff] (%p1578_p10), %v694_v29  }
 0x1c9   : > { %v514_v10 = vpop.permute.xlu1 %513  ;;  %v516_v11 = vpop.permute.xlu0 %515 }
 0x1ca   : > { %1162 = vst.msk [vmem:[%s1650_s8 + $0x14] sm:$0xf] %vm438_vm1, %v514_v10  ;;  %1163 = vst.msk [vmem:[%s1650_s8 + $0x18] sm:$0xf] %vm438_vm1, %v516_v11 }
 0x1cd   : > { %v518_v12 = vpop.permute.xlu1 %517  ;;  %v563_v13 = vpop.permute.xlu0 %562 }
 0x1ce   : > { %1164 = vst.msk [vmem:[%s1650_s8 + $0x1c] sm:$0xf] %vm438_vm1, %v518_v12  ;;  %1173 = vst.msk [vmem:[%s1650_s8 + $0x20] sm:$0xf] %vm438_vm1, %v563_v13 }
 0x1d1   : > { %v565_v14 = vpop.permute.xlu1 %564  ;;  %v567_v15 = vpop.permute.xlu0 %566 }
 0x1d2   : > { %1174 = vst.msk [vmem:[%s1650_s8 + $0x24] sm:$0xf] %vm438_vm1, %v565_v14  ;;  %1175 = vst.msk [vmem:[%s1650_s8 + $0x28] sm:$0xf] %vm438_vm1, %v567_v15 }
 0x1d5   : > { %v569_v16 = vpop.permute.xlu1 %568  ;;  %v614_v17 = vpop.permute.xlu0 %613 }
 0x1d6   : > { %1176 = vst.msk [vmem:[%s1650_s8 + $0x2c] sm:$0xf] %vm438_vm1, %v569_v16  ;;  %1185 = vst.msk [vmem:[%s1650_s8 + $0x30] sm:$0xf] %vm438_vm1, %v614_v17 }
 0x1d9   : > { %v616_v18 = vpop.permute.xlu1 %615  ;;  %v446_v19 = vpop.permute.xlu0 %445 }
 0x1da   : > { %1186 = vst.msk [vmem:[%s1650_s8 + $0x34] sm:$0xf] %vm438_vm1, %v616_v18  ;;  %456 = vst.msk [vmem:[%s1679_s10 + $0x4] sm:$0xf] %vm438_vm1, %v446_v19  ;;  %644 = sbr.rel (!%p1578_p10) target bundleno = 479 (0x1df), region = 44 }
 0x1dd   : > { %v620_v20 = vpop.permute.xlu1 %619  ;;  %v618_v21 = vpop.permute.xlu0 %617 }
 0x1de   : > { %1188 = vst.msk [vmem:[%s1650_s8 + $0x3c] sm:$0xf] %vm438_vm1, %v620_v20  ;;  %1187 = vst.msk [vmem:[%s1650_s8 + $0x38] sm:$0xf] %vm438_vm1, %v618_v21 }
 0x1df PF: > { %753 = sbr.rel (!%p1578_p10) target bundleno = 493 (0x1ed), region = 85  ;;  %s1859_s27 = sld [smem:[#allocation11_spill]] (%p1578_p10)  ;;  %v779_v31 = vld [vmem:[%s1679_s10 + $0x8] sm:$0xff] (%p1578_p10)   ;;  %v783_v32 = vld [vmem:[%s1679_s10 + $0x10] sm:$0xff] (%p1578_p10)   ;;  %v787_v33 = vld [vmem:[%s1679_s10 + $0x18] sm:$0xff] (%p1578_p10)  }
 0x1e0   : > { %s1195_s29 = sshll.u32 (%p1578_p10), %s1431_s21, 2  ;;  %v791_v34 = vld [vmem:[%s1679_s10 + $0x20] sm:$0xff] (%p1578_p10)   ;;  %v795_v35 = vld [vmem:[%s1679_s10 + $0x28] sm:$0xff] (%p1578_p10)   ;;  %v799_v36 = vld [vmem:[%s1679_s10 + $0x30] sm:$0xff] (%p1578_p10)   ;;  %s1860_s6 = sld [smem:[#allocation15_spill]] (%p1578_p10) }
 0x1e1   : > { %v775_v30 = vld [vmem:[%s1679_s10] sm:$0xff] (%p1578_p10)   ;;  %v803_v37 = vld [vmem:[%s1679_s10 + $0x38] sm:$0xff] (%p1578_p10)  }
 0x1e5   : > { %s1196_s30 = sshll.u32 %s1859_s27, 5 }
 0x1e6   : > { %s756_s11 = sadd.s32 %s1196_s30, %s1195_s29 }
 0x1e7   : > { %s1197_s12 = sshll.u32 %s756_s11, 2 }
 0x1e8   : > { %s758_s9 = scalar_lea.vmem %s1860_s6, %s1197_s12 }
 0x1e9   : > { %776 = vst [vmem:[%s758_s9] sm:$0xff] %v775_v30   ;;  %780 = vst [vmem:[%s758_s9 + $0x8] sm:$0xff] %v779_v31  }
 0x1ea   : > { %784 = vst [vmem:[%s758_s9 + $0x20] sm:$0xff] %v783_v32   ;;  %788 = vst [vmem:[%s758_s9 + $0x28] sm:$0xff] %v787_v33  }
 0x1eb   : > { %792 = vst [vmem:[%s758_s9 + $0x40] sm:$0xff] %v791_v34   ;;  %796 = vst [vmem:[%s758_s9 + $0x48] sm:$0xff] %v795_v35  }
 0x1ec   : > { %800 = vst [vmem:[%s758_s9 + $0x60] sm:$0xff] %v799_v36   ;;  %804 = vst [vmem:[%s758_s9 + $0x68] sm:$0xff] %v803_v37  }
 0x1ed PF: > { %862 = sbr.rel (!%p1578_p10) target bundleno = 507 (0x1fb), region = 126  ;;  %s1861_s15 = sld [smem:[#allocation11_spill]] (%p1578_p10)  ;;  %v884_v38 = vld [vmem:[%s1650_s8] sm:$0xff] (%p1578_p10)   ;;  %v888_v39 = vld [vmem:[%s1650_s8 + $0x8] sm:$0xff] (%p1578_p10)   ;;  %v892_v40 = vld [vmem:[%s1650_s8 + $0x10] sm:$0xff] (%p1578_p10)  }
 0x1ee   : > { %s1198_s10 = sshll.u32 (%p1578_p10), %s1431_s21, 2  ;;  %v896_v41 = vld [vmem:[%s1650_s8 + $0x18] sm:$0xff] (%p1578_p10)   ;;  %v900_v42 = vld [vmem:[%s1650_s8 + $0x20] sm:$0xff] (%p1578_p10)   ;;  %v904_v43 = vld [vmem:[%s1650_s8 + $0x28] sm:$0xff] (%p1578_p10)   ;;  %s1862_s26 = sld [smem:[#allocation16_spill]] (%p1578_p10) }
 0x1ef   : > { %v908_v44 = vld [vmem:[%s1650_s8 + $0x30] sm:$0xff] (%p1578_p10)   ;;  %v912_v45 = vld [vmem:[%s1650_s8 + $0x38] sm:$0xff] (%p1578_p10)  }
 0x1f3   : > { %s1199_s4 = sshll.u32 %s1861_s15, 5 }
 0x1f4   : > { %s865_s5 = sadd.s32 %s1199_s4, %s1198_s10 }
 0x1f5   : > { %s1200_s18 = sshll.u32 %s865_s5, 2 }
 0x1f6   : > { %s867_s7 = scalar_lea.vmem %s1862_s26, %s1200_s18 }
 0x1f7   : > { %885 = vst [vmem:[%s867_s7] sm:$0xff] %v884_v38   ;;  %889 = vst [vmem:[%s867_s7 + $0x8] sm:$0xff] %v888_v39  }
 0x1f8   : > { %893 = vst [vmem:[%s867_s7 + $0x20] sm:$0xff] %v892_v40   ;;  %897 = vst [vmem:[%s867_s7 + $0x28] sm:$0xff] %v896_v41  }
 0x1f9   : > { %901 = vst [vmem:[%s867_s7 + $0x40] sm:$0xff] %v900_v42   ;;  %905 = vst [vmem:[%s867_s7 + $0x48] sm:$0xff] %v904_v43  }
 0x1fa   : > { %909 = vst [vmem:[%s867_s7 + $0x60] sm:$0xff] %v908_v44   ;;  %913 = vst [vmem:[%s867_s7 + $0x68] sm:$0xff] %v912_v45  }
 0x1fb PF: > { %s20_s25 = sadd.s32 1, %s1447_s25   ;;  %s1863_s8 = sld [smem:[#allocation12_spill]] }
 0x1fc   : > { %p17_p1 = scmp.ge.s32.totalorder %s20_s25, 6   ;;  %s1864_s18 = smov %s1423_s19 }
 0x1fd   : > { %s1865_s19 = smov %s1427_s20  ;;  %s1866_s20 = smov %s1591_s1 }
 0x1fe   : > { %s1867_s21 = smov %s1439_s23  ;;  %s1868_s22 = smov %s1443_s24 }
 0x1ff   : > { %s1870_s24 = smov %s1876_s14  ;;  %19 = sbr.rel (!%p17_p1) target bundleno = 11 (0xb), region = 232 }
 0x201   : > { %s1869_s23 = smov %s1863_s8 }
 0x204   :  { %995 = vsyncpa [#allocation3], 1 }
 0x205   :  { %997 = vsyncpa [#allocation3 + $0x1], 1 }
 0x206   :  { %998 = vsyncpa [#allocation5], 1 }

</bundles_post_ra>
